<compile_context>
chip_gen: v5e
topology: v5e:2x2
jax: 0.10.0
libtpu: 0.0.40
codegen_flags: <defaults>
</compile_context>

<pallas_src>
import math
import functools

import jax
import jax.numpy as jnp
from jax.experimental import pallas as pl
from jax.experimental.pallas import tpu as pltpu

EPS = 1e-5        # nn.LayerNorm default
NEG_INF = -1e30


# ---------------------------------------------------------------------------
# helpers
# ---------------------------------------------------------------------------
def _vmem_limit_bytes():
    """Scoped-VMEM limit: above the 16/32 MiB defaults, within v7x's 64 MiB."""
    try:
        info = pltpu.get_tpu_info()
        cap = getattr(info, "vmem_capacity_bytes", None)
        if cap:
            return int(min(cap * 3 // 4, 96 * 1024 * 1024))
    except Exception:
        pass
    return 48 * 1024 * 1024


VMEM_LIMIT = _vmem_limit_bytes()


def _softmax_exp_dtype():
    """bf16 exponentials on v6e/v7x (bf16 EUP); keep f32 on v5e and older."""
    try:
        kind = jax.devices()[0].device_kind.lower()
    except Exception:
        return jnp.float32
    if "v6" in kind or "v7" in kind:
        return jnp.bfloat16
    return jnp.float32


def _gelu_tanh(x):
    # GELU(approximate='tanh'), matching torch.nn.GELU(approximate='tanh')
    c = math.sqrt(2.0 / math.pi)
    return 0.5 * x * (1.0 + jnp.tanh(c * (x + 0.044715 * x * x * x)))


def _pick_tile(dim, target, align):
    """Largest tile <= target that divides dim AND is a multiple of `align`.

    Falls back to the full dim (always a legal block shape) if no aligned
    divisor exists, so we never emit a (8,128)-violating tile.
    """
    if dim <= target:
        return dim
    for t in range(target, align - 1, -1):
        if dim % t == 0 and t % align == 0:
            return t
    return dim


# ---------------------------------------------------------------------------
# Kernel 1: fused LayerNorm + matmul (+optional bias, optional tanh-GELU)
#   grid (M//tm, N//tn); N axis is innermost/"arbitrary" so the LayerNorm of
#   the row tile is computed once (at j==0) into a VMEM scratch and re-used
#   for every output-column tile.
# ---------------------------------------------------------------------------
def ln_matmul_kernel(*refs, activation, has_bias):
    if has_bias:
        x_ref, g_ref, bln_ref, w_ref, b_ref, o_ref, xn_ref = refs
    else:
        x_ref, g_ref, bln_ref, w_ref, o_ref, xn_ref = refs
        b_ref = None

    @pl.when(pl.program_id(1) == 0)
    def _():
        x = x_ref[...].astype(jnp.float32)
        mu = jnp.mean(x, axis=-1, keepdims=True)
        var = jnp.mean(jnp.square(x - mu), axis=-1, keepdims=True)
        xn = (x - mu) * jax.lax.rsqrt(var + EPS)
        xn_ref[...] = (xn * g_ref[...] + bln_ref[...]).astype(xn_ref.dtype)

    y = jnp.dot(xn_ref[...], w_ref[...], preferred_element_type=jnp.float32)
    if has_bias:
        y = y + b_ref[...]
    if activation == "gelu":
        y = _gelu_tanh(y)
    o_ref[...] = y.astype(o_ref.dtype)


def ln_linear(x, gamma, beta, w, b, out_dtype, activation=None,
              tm_target=256, tn_target=1024):
    M, C = x.shape
    _, N = w.shape
    tm = _pick_tile(M, tm_target, 8)
    tn = _pick_tile(N, tn_target, 128)
    grid = (M // tm, N // tn)
    has_bias = b is not None

    in_specs = [
        pl.BlockSpec((tm, C), lambda i, j: (i, 0)),
        pl.BlockSpec((1, C), lambda i, j: (0, 0)),
        pl.BlockSpec((1, C), lambda i, j: (0, 0)),
        pl.BlockSpec((C, tn), lambda i, j: (0, j)),
    ]
    args = [x, gamma, beta, w]
    if has_bias:
        in_specs.append(pl.BlockSpec((1, tn), lambda i, j: (0, j)))
        args.append(b)

    kernel = functools.partial(ln_matmul_kernel, activation=activation,
                               has_bias=has_bias)
    return pl.pallas_call(
        kernel,
        grid=grid,
        in_specs=in_specs,
        out_specs=pl.BlockSpec((tm, tn), lambda i, j: (i, j)),
        out_shape=jax.ShapeDtypeStruct((M, N), out_dtype),
        scratch_shapes=[pltpu.VMEM((tm, C), jnp.bfloat16)],   # normalized rows
        compiler_params=pltpu.CompilerParams(
            dimension_semantics=("parallel", "arbitrary"),
            vmem_limit_bytes=VMEM_LIMIT),
    )(*args)


# ---------------------------------------------------------------------------
# Kernel 2: tiled matmul + bias + residual (the Block c_proj layers)
#   grid (M//tm, N//tn, K//tk) with a VMEM f32 accumulator, K axis last.
# ---------------------------------------------------------------------------
def matmul_bias_residual_kernel(x_ref, w_ref, b_ref, r_ref, o_ref, acc_ref):
    @pl.when(pl.program_id(2) == 0)
    def _():
        acc_ref[...] = jnp.zeros_like(acc_ref)

    acc_ref[...] += jnp.dot(x_ref[...], w_ref[...],
                            preferred_element_type=jnp.float32)

    @pl.when(pl.program_id(2) == pl.num_programs(2) - 1)
    def _():
        o_ref[...] = (acc_ref[...] + b_ref[...]
                      + r_ref[...].astype(jnp.float32)).astype(o_ref.dtype)


def linear_bias_residual(x, w, b, res,
                         tm_target=512, tn_target=512, tk_target=512):
    M, K = x.shape
    _, N = w.shape
    tm = _pick_tile(M, tm_target, 8)
    tn = _pick_tile(N, tn_target, 128)
    tk = _pick_tile(K, tk_target, 128)
    grid = (M // tm, N // tn, K // tk)
    return pl.pallas_call(
        matmul_bias_residual_kernel,
        grid=grid,
        in_specs=[
            pl.BlockSpec((tm, tk), lambda i, j, k: (i, k)),
            pl.BlockSpec((tk, tn), lambda i, j, k: (k, j)),
            pl.BlockSpec((1, tn), lambda i, j, k: (0, j)),
            pl.BlockSpec((tm, tn), lambda i, j, k: (i, j)),
        ],
        out_specs=pl.BlockSpec((tm, tn), lambda i, j, k: (i, j)),
        out_shape=jax.ShapeDtypeStruct((M, N), res.dtype),
        scratch_shapes=[pltpu.VMEM((tm, tn), jnp.float32)],
        compiler_params=pltpu.CompilerParams(
            dimension_semantics=("parallel", "parallel", "arbitrary"),
            vmem_limit_bytes=VMEM_LIMIT),
    )(x, w, b, res)


# ---------------------------------------------------------------------------
# Kernel 3: causal flash attention.  The (B,T,3C) QKV slab is split by
# BlockSpec into per-operand (1,t,C) blocks; the K/V index is clamped so
# fully-masked kv tiles are never DMA'd; online softmax with lane-dense
# (tq, C) accumulator updates.
# ---------------------------------------------------------------------------
def flash_attn_kernel(q_ref, k_ref, v_ref, o_ref, m_ref, l_ref, acc_ref,
                      *, H, Dh, tq, tkv, exp_dtype):
    qi = pl.program_id(1)
    ki = pl.program_id(2)

    @pl.when(ki == 0)
    def _():
        m_ref[...] = jnp.full_like(m_ref, NEG_INF)
        l_ref[...] = jnp.zeros_like(l_ref)
        acc_ref[...] = jnp.zeros_like(acc_ref)

    q_start = qi * tq
    k_start = ki * tkv

    def process(masked):
        q = q_ref[0]          # (tq,  C) bf16
        k = k_ref[0]          # (tkv, C) bf16
        v = v_ref[0]          # (tkv, C) bf16
        if masked:
            row = q_start + jax.lax.broadcasted_iota(jnp.int32, (tq, tkv), 0)
            col = k_start + jax.lax.broadcasted_iota(jnp.int32, (tq, tkv), 1)
            mask = col <= row
        pv_parts, alpha_parts = [], []
        for h in range(H):                                 # static head unroll
            sl = slice(h * Dh, (h + 1) * Dh)
            # NOTE: 1/sqrt(Dh) is folded into the Q columns of w_attn at init.
            s = jax.lax.dot_general(q[:, sl], k[:, sl],
                                    (((1,), (1,)), ((), ())),
                                    preferred_element_type=jnp.float32)
            if masked:
                s = jnp.where(mask, s, NEG_INF)
            m_prev = m_ref[h]                              # (tq, 1) f32
            m_new = jnp.maximum(m_prev, jnp.max(s, axis=-1, keepdims=True))
            alpha = jnp.exp(m_prev - m_new)                # (tq, 1) f32
            p = jnp.exp((s - m_new).astype(exp_dtype))     # (tq, tkv)
            l_ref[h] = alpha * l_ref[h] + jnp.sum(
                p.astype(jnp.float32), axis=-1, keepdims=True)
            m_ref[h] = m_new
            pv_parts.append(jnp.dot(p.astype(jnp.bfloat16), v[:, sl],
                                    preferred_element_type=jnp.float32))
            alpha_parts.append(jnp.broadcast_to(alpha, (tq, Dh)))
        # Single lane-dense (tq, C) accumulator update per kv step (no
        # per-head sub-128-lane masked stores).
        acc_ref[...] = (jnp.concatenate(alpha_parts, axis=-1) * acc_ref[...]
                        + jnp.concatenate(pv_parts, axis=-1))

    fully_visible = k_start + tkv - 1 <= q_start       # entire tile unmasked
    on_diagonal = jnp.logical_and(k_start <= q_start + tq - 1,
                                  jnp.logical_not(fully_visible))

    @pl.when(fully_visible)
    def _():
        process(masked=False)

    @pl.when(on_diagonal)
    def _():
        process(masked=True)

    @pl.when(ki == pl.num_programs(2) - 1)
    def _():
        inv_parts = [jnp.broadcast_to(pl.reciprocal(l_ref[h], approx=True),
                                      (tq, Dh)) for h in range(H)]
        o_ref[0] = (acc_ref[...]
                    * jnp.concatenate(inv_parts, axis=-1)).astype(o_ref.dtype)


def causal_attention(qkv, n_head, tq_target=128, tkv_target=128):
    B, T, C3 = qkv.shape
    C = C3 // 3
    Dh = C // n_head
    tq = _pick_tile(T, tq_target, 8)
    tkv = _pick_tile(T, tkv_target, 8)
    grid = (B, T // tq, T // tkv)

    def kv_index(which):
        def index(b, qi, ki):
            # Clamp: kv steps past the causal diagonal revisit the same block
            # so the pipeline skips their DMA entirely (compute is skipped by
            # pl.when inside the kernel).
            last_needed = (qi * tq + tq - 1) // tkv
            return (b, jnp.minimum(ki, last_needed), which)
        return index

    kernel = functools.partial(flash_attn_kernel, H=n_head, Dh=Dh,
                               tq=tq, tkv=tkv, exp_dtype=_softmax_exp_dtype())
    return pl.pallas_call(
        kernel,
        grid=grid,
        in_specs=[
            pl.BlockSpec((1, tq, C), lambda b, qi, ki: (b, qi, 0)),   # Q
            pl.BlockSpec((1, tkv, C), kv_index(1)),                   # K
            pl.BlockSpec((1, tkv, C), kv_index(2)),                   # V
        ],
        out_specs=pl.BlockSpec((1, tq, C), lambda b, qi, ki: (b, qi, 0)),
        out_shape=jax.ShapeDtypeStruct((B, T, C), jnp.bfloat16),
        scratch_shapes=[
            pltpu.VMEM((n_head, tq, 1), jnp.float32),   # running max  m
            pltpu.VMEM((n_head, tq, 1), jnp.float32),   # running sum  l
            pltpu.VMEM((tq, C), jnp.float32),           # output accumulator
        ],
        compiler_params=pltpu.CompilerParams(
            dimension_semantics=("parallel", "parallel", "arbitrary"),
            vmem_limit_bytes=VMEM_LIMIT),
    )(qkv, qkv, qkv)


# ---------------------------------------------------------------------------
# Parameter init (matches GPT._init_weights semantics; weights stored bf16)
# ---------------------------------------------------------------------------
def init_params(key, cfg):
    V, Tm, L, C, H = (cfg["vocab_size"], cfg["block_size"], cfg["n_layer"],
                      cfg["n_embd"], cfg["n_head"])
    std = 0.02
    std_proj = 0.02 * (2 * L) ** -0.5       # NANOGPT_SCALE_INIT for c_proj
    attn_scale = 1.0 / math.sqrt(C // H)

    def normal(k, shape, s):
        return s * jax.random.normal(k, shape, dtype=jnp.float32)

    key, kte, kpe = jax.random.split(key, 3)
    wte = normal(kte, (V, C), std)                        # f32 for the gather
    params = {
        "wte": wte,
        "wte_head": wte.T.astype(jnp.bfloat16),           # tied head, transposed once
        "wpe": normal(kpe, (Tm, C), std),
        "ln_f_g": jnp.ones((1, C), jnp.float32),
        "ln_f_b": jnp.zeros((1, C), jnp.float32),
    }
    blocks = []
    for _ in range(L):
        key, ka, kb, kc, kd = jax.random.split(key, 5)
        w_attn = normal(ka, (C, 3 * C), std)
        # Fold 1/sqrt(Dh) into the Q columns of the QKV projection (the Q bias
        # is zero so it needs no scaling) -> no per-step scale in the kernel.
        w_attn = w_attn.at[:, :C].multiply(attn_scale)
        blocks.append(dict(
            ln1_g=jnp.ones((1, C), jnp.float32),
            ln1_b=jnp.zeros((1, C), jnp.float32),
            w_attn=w_attn.astype(jnp.bfloat16),
            b_attn=jnp.zeros((1, 3 * C), jnp.float32),
            w_aproj=normal(kb, (C, C), std_proj).astype(jnp.bfloat16),
            b_aproj=jnp.zeros((1, C), jnp.float32),
            ln2_g=jnp.ones((1, C), jnp.float32),
            ln2_b=jnp.zeros((1, C), jnp.float32),
            w_fc=normal(kc, (C, 4 * C), std).astype(jnp.bfloat16),
            b_fc=jnp.zeros((1, 4 * C), jnp.float32),
            w_mproj=normal(kd, (4 * C, C), std_proj).astype(jnp.bfloat16),
            b_mproj=jnp.zeros((1, C), jnp.float32),
        ))
    return params, blocks


# ---------------------------------------------------------------------------
# GPT forward (targets=None path -> returns logits)
# ---------------------------------------------------------------------------
def gpt_forward(params, blocks, idx, cfg, logits_dtype=jnp.float32):
    B, T = idx.shape
    C, H = cfg["n_embd"], cfg["n_head"]
    assert T <= cfg["block_size"]
    M = B * T

    # TODO(synk): token/position embedding gather kept as plain-JAX glue.
    tok = jnp.take(params["wte"], idx, axis=0)             # (B, T, C) f32
    pos = params["wpe"][:T][None, :, :]                    # (1, T, C)
    x2 = (tok + pos).astype(jnp.float32).reshape(M, C)     # residual stream f32

    for blk in blocks:
        # attention sub-block: fused LN -> QKV matmul -> flash attn -> proj+res
        qkv = ln_linear(x2, blk["ln1_g"], blk["ln1_b"], blk["w_attn"],
                        blk["b_attn"], out_dtype=jnp.bfloat16)      # (M,3C) bf16
        a = causal_attention(qkv.reshape(B, T, 3 * C), H)           # (B,T,C) bf16
        x2 = linear_bias_residual(a.reshape(M, C), blk["w_aproj"],
                                  blk["b_aproj"], x2)               # (M,C) f32
        # MLP sub-block: fused LN -> fc + GELU -> proj + residual
        hmid = ln_linear(x2, blk["ln2_g"], blk["ln2_b"], blk["w_fc"],
                         blk["b_fc"], out_dtype=jnp.bfloat16,
                         activation="gelu")                          # (M,4C) bf16
        x2 = linear_bias_residual(hmid, blk["w_mproj"], blk["b_mproj"], x2)

    # Final LayerNorm fused into the tied lm_head matmul (no bias -> no DMA).
    logits = ln_linear(x2, params["ln_f_g"], params["ln_f_b"],
                       params["wte_head"], None,
                       out_dtype=logits_dtype, tm_target=512)        # (M, V)
    return logits.reshape(B, T, -1)


# ---------------------------------------------------------------------------
if __name__ == "__main__":
    # n_embd is a lane-width multiple so the split QKV BlockSpecs are legal.
    cfg = dict(vocab_size=64, block_size=16, n_layer=2, n_head=2, n_embd=128)
    B, T = 2, 8

    key = jax.random.PRNGKey(0)
    key, kp, ki = jax.random.split(key, 3)
    params, blocks = init_params(kp, cfg)
    idx = jax.random.randint(ki, (B, T), 0, cfg["vocab_size"], dtype=jnp.int32)

    logits = gpt_forward(params, blocks, idx, cfg)
    logits = jax.block_until_ready(logits)
    assert logits.shape == (B, T, cfg["vocab_size"])
    assert logits.dtype == jnp.float32
    assert bool(jnp.all(jnp.isfinite(logits)))
    print("KERNEL_OK")
</pallas_src>

<mosaic_0001>
module attributes {stable_mosaic.version = 11 : i64} {
  func.func @ln_matmul_kernel(%arg0: i32, %arg1: i32, %arg2: memref<16x128xf32, #tpu.memory_space<vmem>>, %arg3: memref<1x128xf32, #tpu.memory_space<vmem>>, %arg4: memref<1x128xf32, #tpu.memory_space<vmem>>, %arg5: memref<128x384xbf16, #tpu.memory_space<vmem>>, %arg6: memref<1x384xf32, #tpu.memory_space<vmem>>, %arg7: memref<16x384xbf16, #tpu.memory_space<vmem>>, %arg8: memref<16x128xbf16, #tpu.memory_space<vmem>>) attributes {dimension_semantics = [#tpu.dimension_semantics<parallel>, #tpu.dimension_semantics<arbitrary>], iteration_bounds = array<i64: 1, 1>, scalar_prefetch = 0 : i64, scratch_operands = 1 : i64, tpu.core_type = #tpu.core_type<tc>, window_params = [{transform_indices = @transform_0, window_bounds = array<i64: 16, 128>}, {pipeline_mode = #tpu.pipeline_mode<synchronous>, transform_indices = @transform_1, window_bounds = array<i64: 1, 128>}, {pipeline_mode = #tpu.pipeline_mode<synchronous>, transform_indices = @transform_2, window_bounds = array<i64: 1, 128>}, {transform_indices = @transform_3, window_bounds = array<i64: 128, 384>}, {transform_indices = @transform_4, window_bounds = array<i64: 1, 384>}, {transform_indices = @transform_5, window_bounds = array<i64: 16, 384>}]} {
    %c0_i32 = arith.constant 0 : i32
    %0 = arith.cmpi eq, %arg1, %c0_i32 : i32
    %1 = arith.extui %0 : i1 to i32
    %c0_i32_0 = arith.constant 0 : i32
    %2 = arith.cmpi ne, %1, %c0_i32_0 : i32
    scf.if %2 {
      %c0_8 = arith.constant 0 : index
      %c0_9 = arith.constant 0 : index
      %11 = vector.load %arg2[%c0_8, %c0_9] : memref<16x128xf32, #tpu.memory_space<vmem>>, vector<16x128xf32>
      %cst_10 = arith.constant dense<0.000000e+00> : vector<16xf32>
      %12 = vector.multi_reduction <add>, %11, %cst_10 [1] : vector<16x128xf32> to vector<16xf32>
      %13 = vector.shape_cast %12 : vector<16xf32> to vector<16x1xf32>
      %cst_11 = arith.constant 1.280000e+02 : f32
      %14 = vector.broadcast %cst_11 : f32 to vector<16x1xf32>
      %15 = arith.divf %13, %14 : vector<16x1xf32>
      %16 = vector.broadcast %15 : vector<16x1xf32> to vector<16x128xf32>
      %17 = arith.subf %11, %16 : vector<16x128xf32>
      %18 = arith.mulf %17, %17 : vector<16x128xf32>
      %cst_12 = arith.constant dense<0.000000e+00> : vector<16xf32>
      %19 = vector.multi_reduction <add>, %18, %cst_12 [1] : vector<16x128xf32> to vector<16xf32>
      %20 = vector.shape_cast %19 : vector<16xf32> to vector<16x1xf32>
      %cst_13 = arith.constant 1.280000e+02 : f32
      %21 = vector.broadcast %cst_13 : f32 to vector<16x1xf32>
      %22 = arith.divf %20, %21 : vector<16x1xf32>
      %23 = vector.broadcast %15 : vector<16x1xf32> to vector<16x128xf32>
      %24 = arith.subf %11, %23 : vector<16x128xf32>
      %cst_14 = arith.constant 9.99999974E-6 : f32
      %25 = vector.broadcast %cst_14 : f32 to vector<16x1xf32>
      %26 = arith.addf %22, %25 : vector<16x1xf32>
      %27 = math.rsqrt %26 : vector<16x1xf32>
      %28 = vector.broadcast %27 : vector<16x1xf32> to vector<16x128xf32>
      %29 = arith.mulf %24, %28 : vector<16x128xf32>
      %c0_15 = arith.constant 0 : index
      %c0_16 = arith.constant 0 : index
      %30 = vector.load %arg3[%c0_15, %c0_16] : memref<1x128xf32, #tpu.memory_space<vmem>>, vector<1x128xf32>
      %31 = vector.broadcast %30 : vector<1x128xf32> to vector<16x128xf32>
      %32 = arith.mulf %29, %31 : vector<16x128xf32>
      %c0_17 = arith.constant 0 : index
      %c0_18 = arith.constant 0 : index
      %33 = vector.load %arg4[%c0_17, %c0_18] : memref<1x128xf32, #tpu.memory_space<vmem>>, vector<1x128xf32>
      %34 = vector.broadcast %33 : vector<1x128xf32> to vector<16x128xf32>
      %35 = arith.addf %32, %34 : vector<16x128xf32>
      %36 = arith.truncf %35 : vector<16x128xf32> to vector<16x128xbf16>
      %c0_19 = arith.constant 0 : index
      %c0_20 = arith.constant 0 : index
      %37 = vector.load %arg8[%c0_19, %c0_20] : memref<16x128xbf16, #tpu.memory_space<vmem>>, vector<16x128xbf16>
      tpu.vector_store %arg8[%c0_19, %c0_20], %36 {strides = array<i32>} : memref<16x128xbf16, #tpu.memory_space<vmem>>, vector<16x128xbf16>,
    } else {
    }
    %c0 = arith.constant 0 : index
    %c0_1 = arith.constant 0 : index
    %3 = vector.load %arg8[%c0, %c0_1] : memref<16x128xbf16, #tpu.memory_space<vmem>>, vector<16x128xbf16>
    %c0_2 = arith.constant 0 : index
    %c0_3 = arith.constant 0 : index
    %4 = vector.load %arg5[%c0_2, %c0_3] : memref<128x384xbf16, #tpu.memory_space<vmem>>, vector<128x384xbf16>
    %cst = arith.constant dense<0.000000e+00> : vector<16x384xf32>
    %5 = tpu.matmul %3, %4, %cst {dimension_numbers = #tpu.dot_dimension_numbers<[1], [0], [0], [1], [0, 0, 1, 1], [], []>} : vector<16x128xbf16>, vector<128x384xbf16>, vector<16x384xf32> -> vector<16x384xf32>
    %c0_4 = arith.constant 0 : index
    %c0_5 = arith.constant 0 : index
    %6 = vector.load %arg6[%c0_4, %c0_5] : memref<1x384xf32, #tpu.memory_space<vmem>>, vector<1x384xf32>
    %7 = vector.broadcast %6 : vector<1x384xf32> to vector<16x384xf32>
    %8 = arith.addf %5, %7 : vector<16x384xf32>
    %9 = arith.truncf %8 : vector<16x384xf32> to vector<16x384xbf16>
    %c0_6 = arith.constant 0 : index
    %c0_7 = arith.constant 0 : index
    %10 = vector.load %arg7[%c0_6, %c0_7] : memref<16x384xbf16, #tpu.memory_space<vmem>>, vector<16x384xbf16>
    tpu.vector_store %arg7[%c0_6, %c0_7], %9 {strides = array<i32>} : memref<16x384xbf16, #tpu.memory_space<vmem>>, vector<16x384xbf16>,
    return
  }
  func.func @transform_0(%arg0: i32, %arg1: i32) -> (i32, i32) {
    %c0_i32 = arith.constant 0 : i32
    %c0_i32_0 = arith.constant 0 : i32
    return %arg0, %c0_i32 : i32, i32
  }
  func.func @transform_1(%arg0: i32, %arg1: i32) -> (i32, i32) {
    %c0_i32 = arith.constant 0 : i32
    %c0_i32_0 = arith.constant 0 : i32
    %c0_i32_1 = arith.constant 0 : i32
    return %c0_i32, %c0_i32_0 : i32, i32
  }
  func.func @transform_2(%arg0: i32, %arg1: i32) -> (i32, i32) {
    %c0_i32 = arith.constant 0 : i32
    %c0_i32_0 = arith.constant 0 : i32
    %c0_i32_1 = arith.constant 0 : i32
    return %c0_i32, %c0_i32_0 : i32, i32
  }
  func.func @transform_3(%arg0: i32, %arg1: i32) -> (i32, i32) {
    %c0_i32 = arith.constant 0 : i32
    %c0_i32_0 = arith.constant 0 : i32
    return %c0_i32, %arg1 : i32, i32
  }
  func.func @transform_4(%arg0: i32, %arg1: i32) -> (i32, i32) {
    %c0_i32 = arith.constant 0 : i32
    %c0_i32_0 = arith.constant 0 : i32
    return %c0_i32, %arg1 : i32, i32
  }
  func.func @transform_5(%arg0: i32, %arg1: i32) -> (i32, i32) {
    %c0_i32 = arith.constant 0 : i32
    return %arg0, %arg1 : i32, i32
  }
}

</mosaic_0001>

<bundles_post_ra>
// kernel: tpu_custom_call.1
= control target key start
LH: loop header
LB: loop body
LE: loop exit
PB: predicated region body
PF: predicated region fallthrough
CT: control target
= control target key end

     0   :  { %10 = vsyncpa [#allocation4], 0  ;;  %s752_s0 = inlined_call_operand.hbm [shape: f32[16,128], index: 0, kind: input, shape index: {}]   ;;  %s753_s1 = inlined_call_operand.hbm [shape: f32[1,128], index: 1, kind: input, shape index: {}]   ;;  %s754_s2 = inlined_call_operand.hbm [shape: f32[1,128], index: 2, kind: input, shape index: {}]   ;;  %s755_s3 = inlined_call_operand.hbm [shape: bf16[128,384], index: 3, kind: input, shape index: {}]   ;;  %s756_s4 = inlined_call_operand.vmem [shape: f32[1,384], index: 4, kind: input, shape index: {}]   ;;  %s757_s5 = inlined_call_operand.hbm [shape: bf16[16,384], index: 5, kind: output, shape index: {}]  }
   0x1   :  { %11 = vsyncpa [#allocation7], 0 }
   0x2   :  { %12 = vsyncpa [#allocation10], 0  ;;  %s32_s20 = sshll.u32 %s753_s1, 4  ;;  %s33_s20 = int_to_ptr.hbm [resolvable:$true] %s32_s20 }
   0x3   :  { %13 = vsyncpa [#allocation5], 0  ;;  %s672_s21 = smov [#allocation6]   ;;  %s18_s25 = sshll.u32 %s752_s0, 4  ;;  %s19_s25 = int_to_ptr.hbm [resolvable:$true] %s18_s25 }
   0x4   :  { %s34_s22 = sshll.u32 %s672_s21, 4  ;;  %s673_s26 = smov [#allocation3]   ;;  %s35_s22 = int_to_ptr.vmem [resolvable:$true] %s34_s22 }
   0x5   :  { %37 = dma.hbm_to_vmem [thread:$0]  %s33_s20, 16, %s35_s22, [#allocation7]  }
   0x6   :  { %s20_s27 = sshll.u32 %s673_s26, 4  ;;  %s674_s28 = smov 128   ;;  %s21_s27 = int_to_ptr.vmem [resolvable:$true] %s20_s27 }
   0x7   :  { %s675_s29 = smov 8   ;;  %s43_s1 = sshll.u32 %s754_s2, 4  ;;  %s44_s1 = int_to_ptr.hbm [resolvable:$true] %s43_s1 }
   0x8   :  { %26 = dma.hbm_to_vmem [thread:$0]  %s19_s25, 256, %s21_s27, [#allocation4], %s674_s28, %s674_s28, %s675_s29  }
   0x9   :  { %s676_s7 = smov [#allocation8]   ;;  %s53_s0 = sshll.u32 %s755_s3, 4  ;;  %s54_s0 = int_to_ptr.hbm [resolvable:$true] %s53_s0 }
   0xa   :  { %s45_s8 = sshll.u32 %s676_s7, 4  ;;  %s677_s11 = smov [#allocation9]   ;;  %s46_s8 = int_to_ptr.vmem [resolvable:$true] %s45_s8 }
   0xb   :  { %48 = dma.hbm_to_vmem [thread:$0]  %s44_s1, 16, %s46_s8, [#allocation7]  }
   0xc   :  { %s55_s12 = sshll.u32 %s677_s11, 4  ;;  %s678_s13 = smov 192   ;;  %s56_s12 = int_to_ptr.vmem [resolvable:$true] %s55_s12 }
   0xd   :  { %s679_s14 = smov 12  }
   0xe   :  { %61 = dma.hbm_to_vmem [thread:$0]  %s54_s0, 3072, %s56_s12, [#allocation10], %s678_s13, %s678_s13, %s679_s14  }
   0xf   :  { %664 = dma.done.wait [#allocation4], 256  }
  0x10   :  { %665 = vsyncadd [#allocation4], 4294967040 }
  0x11   :  { %666 = dma.done.wait [#allocation7], 32  }
  0x12   :  { %667 = vsyncadd [#allocation7], 4294967264 }
  0x13   :  { %668 = dma.done.wait [#allocation10], 3072  }
  0x14   :  { %669 = vsyncadd [#allocation10], 4294964224  ;;  %v84_v0 = vld [vmem:[#allocation3] sm:$0xff]  ;;  %v85_v1 = vld [vmem:[#allocation3 + $0x8] sm:$0xff]  ;;  %v680_v2 = vmov 128.0   ;;  %s381_s18 = sshll.u32 %s757_s5, 4  ;;  %s382_s18 = int_to_ptr.hbm [resolvable:$true] %s381_s18 }
  0x15   :  { %86 = vadd.xlane.f32.xlu0 %v84_v0  ;;  %538 = vrcp.f32 %v680_v2  ;;  %v486_v17 = vld [vmem:[#allocation9 + $0xa8] sm:$0xf]  ;;  %v519_v18 = vld [vmem:[#allocation9 + $0xb0] sm:$0xf0]  ;;  %v518_v19 = vld [vmem:[#allocation9 + $0xac] sm:$0xf] }
  0x16   :  { %v487_v20 = vor.u32 %v519_v18, %v486_v17  ;;  %v488_v21 = vld [vmem:[#allocation9 + $0xb4] sm:$0xf0]  ;;  %v494_v22 = vld [vmem:[#allocation9 + $0xb0] sm:$0xf]  ;;  %v520_v23 = vld [vmem:[#allocation9 + $0xb8] sm:$0xf0] }
  0x17   :  { %v491_v24 = vor.u32 %v518_v19, %v488_v21  ;;  %v495_v25 = vor.u32 %v520_v23, %v494_v22  ;;  %v474_v26 = vld [vmem:[#allocation9 + $0x90] sm:$0xf]  ;;  %v516_v27 = vld [vmem:[#allocation9 + $0x98] sm:$0xf0]  ;;  %v515_v28 = vld [vmem:[#allocation9 + $0x94] sm:$0xf] }
  0x18   :  { %325 = vmatpush.bf16.msra.mxu0 %v487_v20  ;;  %v475_v29 = vor.u32 %v516_v27, %v474_v26  ;;  %v476_v30 = vld [vmem:[#allocation9 + $0x9c] sm:$0xf0]  ;;  %v482_v31 = vld [vmem:[#allocation9 + $0x98] sm:$0xf]  ;;  %v517_v32 = vld [vmem:[#allocation9 + $0xa0] sm:$0xf0] }
  0x19   :  { %339 = vmatpush.bf16.msra.mxu1 %v491_v24  ;;  %353 = vmatpush.bf16.msra.mxu2 %v495_v25  ;;  %v479_v33 = vor.u32 %v515_v28, %v476_v30  ;;  %v483_v34 = vor.u32 %v517_v32, %v482_v31  ;;  %v462_v35 = vld [vmem:[#allocation9 + $0x78] sm:$0xf]  ;;  %v513_v36 = vld [vmem:[#allocation9 + $0x80] sm:$0xf0]  ;;  %v512_v37 = vld [vmem:[#allocation9 + $0x7c] sm:$0xf] }
  0x1a   :  { %v463_v38 = vor.u32 %v513_v36, %v462_v35  ;;  %v464_v39 = vld [vmem:[#allocation9 + $0x84] sm:$0xf0]  ;;  %v470_v40 = vld [vmem:[#allocation9 + $0x80] sm:$0xf]  ;;  %v514_v41 = vld [vmem:[#allocation9 + $0x88] sm:$0xf0] }
  0x1b   :  { %v539_v3 = vpop.eup %538  ;;  %v467_v42 = vor.u32 %v512_v37, %v464_v39  ;;  %v471_v43 = vor.u32 %v514_v41, %v470_v40  ;;  %v450_v44 = vld [vmem:[#allocation9 + $0x60] sm:$0xf]  ;;  %v510_v45 = vld [vmem:[#allocation9 + $0x68] sm:$0xf0]  ;;  %v509_v46 = vld [vmem:[#allocation9 + $0x64] sm:$0xf] }
  0x1c   :  { %v91_v4 = vmul.f32 128.0, %v539_v3  ;;  %vm95_vm0 = vweird.f32 %v539_v3  ;;  %326 = vmatpush.bf16.msra.mxu0 %v475_v29  ;;  %v451_v47 = vor.u32 %v510_v45, %v450_v44  ;;  %v452_v48 = vld [vmem:[#allocation9 + $0x6c] sm:$0xf0]  ;;  %v458_v49 = vld [vmem:[#allocation9 + $0x68] sm:$0xf] }
  0x1d   :  { %88 = vadd.xlane.f32.xlu0 %v85_v1  ;;  %340 = vmatpush.bf16.msra.mxu1 %v479_v33  ;;  %v511_v50 = vld [vmem:[#allocation9 + $0x70] sm:$0xf0]  ;;  %v455_v51 = vor.u32 %v509_v46, %v452_v48  ;;  %v438_v53 = vld [vmem:[#allocation9 + $0x48] sm:$0xf]  ;;  %v506_v55 = vld [vmem:[#allocation9 + $0x4c] sm:$0xf] }
  0x1e   :  { %v92_v5 = vsub.f32 1.0, %v91_v4  ;;  %354 = vmatpush.bf16.msra.mxu2 %v483_v34  ;;  %v459_v52 = vor.u32 %v511_v50, %v458_v49  ;;  %v507_v54 = vld [vmem:[#allocation9 + $0x50] sm:$0xf0]  ;;  %v440_v57 = vld [vmem:[#allocation9 + $0x54] sm:$0xf0] }
  0x1f   :  { %v439_v56 = vor.u32 %v507_v54, %v438_v53  ;;  %v446_v58 = vld [vmem:[#allocation9 + $0x50] sm:$0xf]  ;;  %v508_v59 = vld [vmem:[#allocation9 + $0x58] sm:$0xf0]  ;;  %v443_v61 = vor.u32 %v506_v55, %v440_v57  ;;  %v503_v2 = vld [vmem:[#allocation9 + $0x34] sm:$0xf] }
  0x20   :  { %v93_v6 = vmul.f32 %v539_v3, %v92_v5  ;;  %327 = vmatpush.bf16.msra.mxu0 %v463_v38  ;;  %v447_v62 = vor.u32 %v508_v59, %v446_v58  ;;  %v428_v5 = vld [vmem:[#allocation9 + $0x3c] sm:$0xf0]  ;;  %v416_v17 = vld [vmem:[#allocation9 + $0x24] sm:$0xf0]  ;;  %v502_v19 = vld [vmem:[#allocation9 + $0x28] sm:$0xf0] }
  0x21   :  { %341 = vmatpush.bf16.msra.mxu1 %v467_v42  ;;  %v422_v18 = vld [vmem:[#allocation9 + $0x20] sm:$0xf]  ;;  %v498_v24 = vld [vmem:[#allocation9 + $0x8] sm:$0xf0]  ;;  %v497_v25 = vld [vmem:[#allocation9 + $0x4] sm:$0xf] }
  0x22   :  { %v94_v7 = vadd.f32 %v539_v3, %v93_v6  ;;  %355 = vmatpush.bf16.msra.mxu2 %v471_v43  ;;  %v434_v6 = vld [vmem:[#allocation9 + $0x38] sm:$0xf]  ;;  %v423_v22 = vor.u32 %v502_v19, %v422_v18  ;;  %v402_v23 = vld [vmem:[#allocation9] sm:$0xf]  ;;  %v404_v28 = vld [vmem:[#allocation9 + $0xc] sm:$0xf0] }
  0x23   :  { %v403_v27 = vor.u32 %v498_v24, %v402_v23  ;;  %v410_v29 = vld [vmem:[#allocation9 + $0x8] sm:$0xf]  ;;  %v499_v30 = vld [vmem:[#allocation9 + $0x10] sm:$0xf0]  ;;  %v407_v31 = vor.u32 %v497_v25, %v404_v28  ;;  %v536_v45 = vld [vmem:[#allocation6] ss:$0 sm:$0xff] }
  0x24   :  { %v727_v8 = vsel %vm95_vm0, %v539_v3, %v94_v7  ;;  %328 = vmatpush.bf16.msra.mxu0 %v451_v47  ;;  %v431_v7 = vor.u32 %v503_v2, %v428_v5  ;;  %v411_v34 = vor.u32 %v499_v30, %v410_v29  ;;  %v537_v49 = vld [vmem:[#allocation8] ss:$0 sm:$0xff] }
  0x25   :  { %342 = vmatpush.bf16.msra.mxu1 %v455_v51 }
  0x26   :  { %356 = vmatpush.bf16.msra.mxu2 %v459_v52 }
  0x28   :  { %329 = vmatpush.bf16.msra.mxu0 %v439_v56 }
  0x29   :  { %343 = vmatpush.bf16.msra.mxu1 %v443_v61 }
  0x2a   :  { %357 = vmatpush.bf16.msra.mxu2 %v447_v62 }
  0x2d   :  { %344 = vmatpush.bf16.msra.mxu1 %v431_v7 }
  0x88   :  { %v87_v9 = vpop.xlane.xlu0 %86 }
  0x89   :  { %v97_v10 = vmul.f32 %v727_v8, %v87_v9  ;;  %v505_v9 = vld [vmem:[#allocation9 + $0x40] sm:$0xf0] }
  0x8b   :  { %v730_v11 = vsub.f32 %v84_v0, %v97_v10  ;;  %v426_v0 = vld [vmem:[#allocation9 + $0x30] sm:$0xf]  ;;  %v435_v10 = vor.u32 %v505_v9, %v434_v6 }
  0x8d   :  { %v101_v12 = vmul.f32 %v730_v11, %v730_v11  ;;  %358 = vmatpush.bf16.msra.mxu2 %v435_v10 }
  0x8f   :  { %103 = vadd.xlane.f32.xlu1 %v101_v12  ;;  %v414_v12 = vld [vmem:[#allocation9 + $0x18] sm:$0xf] }
  0x90   :  { %v89_v13 = vpop.xlane.xlu0 %88 }
  0x91   :  { %v98_v14 = vmul.f32 %v727_v8, %v89_v13  ;;  %v501_v13 = vld [vmem:[#allocation9 + $0x20] sm:$0xf0]  ;;  %359 = vmatpush.bf16.msra.mxu2 %v423_v22 }
  0x93   :  { %v735_v15 = vsub.f32 %v85_v1, %v98_v14  ;;  %v504_v1 = vld [vmem:[#allocation9 + $0x38] sm:$0xf0] }
  0x94   :  { %v427_v4 = vor.u32 %v504_v1, %v426_v0  ;;  %v500_v14 = vld [vmem:[#allocation9 + $0x1c] sm:$0xf] }
  0x95   :  { %v102_v16 = vmul.f32 %v735_v15, %v735_v15  ;;  %v419_v21 = vor.u32 %v500_v14, %v416_v17  ;;  %360 = vmatpush.bf16.msra.mxu2 %v411_v34 }
  0x96   :  { %330 = vmatpush.bf16.msra.mxu0 %v427_v4 }
  0x97   :  { %105 = vadd.xlane.f32.xlu1 %v102_v16  ;;  %v415_v16 = vor.u32 %v501_v13, %v414_v12  ;;  %345 = vmatpush.bf16.msra.mxu1 %v419_v21 }
  0x9a   :  { %331 = vmatpush.bf16.msra.mxu0 %v415_v16 }
  0x9b   :  { %346 = vmatpush.bf16.msra.mxu1 %v407_v31 }
  0x9e   :  { %332 = vmatpush.bf16.msra.mxu0 %v403_v27 }
 0x102   :  { %v104_v60 = vpop.xlane.xlu1 %103 }
 0x103   :  { %v107_v63 = vmul.f32 %v104_v60, %v727_v8 }
 0x105   :  { %v109_v3 = vadd.f32 1e-05, %v107_v63 }
 0x107   :  { %540 = vrsqrt.f32 %v109_v3  ;;  %vm117_vm2 = vweird.f32 %v109_v3 }
 0x10a   :  { %v106_v20 = vpop.xlane.xlu1 %105 }
 0x10b   :  { %v108_v26 = vmul.f32 %v106_v20, %v727_v8 }
 0x10d   :  { %v541_v32 = vpop.eup %540  ;;  %v110_v33 = vadd.f32 1e-05, %v108_v26 }
 0x10e   :  { %v112_v35 = vmul.f32 %v541_v32, %v109_v3  ;;  %vm118_vm1 = vweird.f32 %v541_v32 }
 0x10f   :  { %542 = vrsqrt.f32 %v110_v33  ;;  %vm119_vm3 = vmor %vm117_vm2, %vm118_vm1  ;;  %vm127_vm5 = vweird.f32 %v110_v33 }
 0x110   :  { %v113_v36 = vmul.f32 %v541_v32, %v112_v35 }
 0x112   :  { %v114_v37 = vmul.f32 0.5, %v113_v36 }
 0x114   :  { %v115_v38 = vsub.f32 1.5, %v114_v37 }
 0x115   :  { %v543_v8 = vpop.eup %542 }
 0x116   :  { %v116_v39 = vmul.f32 %v541_v32, %v115_v38  ;;  %v122_v40 = vmul.f32 %v543_v8, %v110_v33  ;;  %vm128_vm4 = vweird.f32 %v543_v8 }
 0x117   :  { %vm129_vm6 = vmor %vm127_vm5, %vm128_vm4 }
 0x118   :  { %v123_v41 = vmul.f32 %v543_v8, %v122_v40  ;;  %v120_v42 = vsel %vm119_vm3, %v541_v32, %v116_v39 }
 0x119   :  { %v131_v46 = vmul.f32 %v120_v42, %v730_v11  ;;  %v183_v11 = vld [vmem:[%s756_s4] sm:$0x7]  ;;  %s681_s4 = smov [#allocation11]  }
 0x11a   :  { %v124_v43 = vmul.f32 0.5, %v123_v41  ;;  %v185_v57 = vperm.slane %v183_v11, 0  ;;  %v186_v58 = vperm.slane %v183_v11, 1  ;;  %v187_v63 = vperm.slane %v183_v11, 2  ;;  %s379_s15 = sshll.u32 %s681_s4, 4  ;;  %s380_s15 = int_to_ptr.vmem [resolvable:$true] %s379_s15 }
 0x11b   :  { %v137_v50 = vmul.f32 %v536_v45, %v131_v46 }
 0x11c   :  { %v125_v44 = vsub.f32 1.5, %v124_v43 }
 0x11d   :  { %v143_v53 = vadd.f32 %v537_v49, %v137_v50 }
 0x11e   :  { %v126_v47 = vmul.f32 %v543_v8, %v125_v44 }
 0x120   :  { %v130_v48 = vsel %vm129_vm6, %v543_v8, %v126_v47 }
 0x121   :  { %v132_v51 = vmul.f32 %v130_v48, %v735_v15 }
 0x123   :  { %v138_v52 = vmul.f32 %v536_v45, %v132_v51 }
 0x125   :  { %v144_v54 = vadd.f32 %v537_v49, %v138_v52 }
 0x127   :  { %v524_v55 = vpack.c.bf16 %v144_v54, %v143_v53 }
 0x129   :  { %525 = vst [vmem:[#allocation2] sm:$0xff] %v524_v55  }
 0x130   :  { %v496_v56 = vld [vmem:[#allocation2] sm:$0xff] }
 0x131   :  { %333 = vmatmul.bf16.vlgmr.msra.gmra.mxu0 %v496_v56  ;;  %347 = vmatmul.bf16.vlgmr.msra.gmra.mxu1 %v496_v56 }
 0x132   :  { %361 = vmatmul.bf16.vlgmr.msra.gmra.mxu2 %v496_v56 }
 0x1ae   :  { %v334_v59 = vpop.f32.mrf.mxu0  ;;  %v348_v60 = vpop.f32.mrf.mxu1 }
 0x1af   :  { %v335_v61 = vadd.f32 %v334_v59, %v185_v57  ;;  %v349_v62 = vadd.f32 %v348_v60, %v186_v58 }
 0x1b1   :  { %v367_v15 = vpack.c.bf16 %v349_v62, %v335_v61 }
 0x1b3   :  { %371 = vst [vmem:[#allocation11] sm:$0xff] %v367_v15 }
 0x1b5   :  { %v362_v0 = vpop.f32.mrf.mxu2 }
 0x1b6   :  { %v363_v1 = vadd.f32 %v362_v0, %v187_v63  ;;  %v336_v2 = vpop.f32.mrf.mxu0  ;;  %v350_v3 = vpop.f32.mrf.mxu1 }
 0x1b7   :  { %v337_v4 = vadd.f32 %v336_v2, %v185_v57  ;;  %v351_v5 = vadd.f32 %v350_v3, %v186_v58 }
 0x1b8   :  { %v368_v6 = vpack.c.bf16 %v363_v1, %v363_v1 }
 0x1b9   :  { %v369_v7 = vpack.c.bf16 %v351_v5, %v337_v4 }
 0x1ba   :  { %372 = vst [vmem:[#allocation11 + $0x8] sm:$0xf] %v368_v6 }
 0x1bb   :  { %373 = vst [vmem:[#allocation11 + $0xc] sm:$0xff] %v369_v7 }
 0x1bd   :  { %v364_v9 = vpop.f32.mrf.mxu2 }
 0x1be   :  { %v365_v10 = vadd.f32 %v364_v9, %v187_v63 }
 0x1c0   :  { %v370_v12 = vpack.c.bf16 %v365_v10, %v365_v10 }
 0x1c2   :  { %374 = vst [vmem:[#allocation11 + $0x14] sm:$0xf] %v370_v12 }
 0x1c3   :  { %387 = dma.vmem_to_hbm [thread:$0]  %s380_s15, 384, %s382_s18, [#allocation5], %s678_s13, %s678_s13, %s679_s14  }
 0x1c4   :  { %670 = dma.done.wait [#allocation5], 384  }
 0x1c5   :  { %671 = vsyncadd [#allocation5], 4294966912 }
 0x1c6   :  { %392 = vsyncpa [#allocation4], 1 }
 0x1c7   :  { %393 = vsyncpa [#allocation7], 1 }
 0x1c8   :  { %394 = vsyncpa [#allocation10], 1 }
 0x1c9   :  { %395 = vsyncpa [#allocation5], 1 }

</bundles_post_ra>
